<compile_context>
chip_gen: v7x
topology: tpu7x:2x2x1
jax: 0.10.0
libtpu: 0.0.40
codegen_flags: <defaults>
</compile_context>

<pallas_src>
import jax
import jax.numpy as jnp
from jax.experimental import pallas as pl
from jax.experimental.pallas import tpu as pltpu

EN_HIDDEN = 100  # en_linear_1 out_features per critic (fixed by the module)


# ----------------------------- Pallas kernel ------------------------------ #
def _double_critic_kernel(obs_ref, w1_ref, w2_ref, qw_ref, out_ref):
    # h = ReLU([obs | act | skill | 1] @ W1)   (both critics + passthrough lanes)
    h = jnp.maximum(
        jnp.dot(obs_ref[...], w1_ref[...], preferred_element_type=jnp.float32),
        0.0)
    # x = ReLU(h @ W2)   (en_linear_2 folded into fc1; biases via ones lane)
    x = jnp.maximum(
        jnp.dot(h, w2_ref[...], preferred_element_type=jnp.float32),
        0.0)
    # q = x @ W3   (block-diagonal twin q heads; column 0 = q1, column 1 = q2)
    q = jnp.dot(x, qw_ref[...], preferred_element_type=jnp.float32)
    out_ref[...] = q.astype(out_ref.dtype)


def double_critic_forward(observation, action, skill, fused, block_b=512):
    """fused: dict with fused weights 'w1' (266,209), 'w2' (209,13), 'qw' (13,2)."""
    B = observation.shape[0]
    ones = jnp.ones((B, 1), jnp.float32)
    obs_aug = jnp.concatenate(
        [observation.astype(jnp.float32),
         action.astype(jnp.float32),
         skill.astype(jnp.float32),
         ones], axis=-1)                                   # (B, 266)

    w1, w2, qw = fused["w1"], fused["w2"], fused["qw"]
    d_in = obs_aug.shape[1]

    # Row-block the batch; keep weights whole-array (VMEM-resident) blocks.
    bb = B if B <= block_b else block_b                    # bb=512 is 8-aligned
    nblk = pl.cdiv(B, bb)
    b_pad = nblk * bb
    if b_pad != B:
        obs_aug = jnp.pad(obs_aug, ((0, b_pad - B), (0, 0)))

    out = pl.pallas_call(
        _double_critic_kernel,
        out_shape=jax.ShapeDtypeStruct((b_pad, 2), jnp.float32),
        grid_spec=pltpu.PrefetchScalarGridSpec(
            num_scalar_prefetch=0,
            grid=(nblk,),
            in_specs=[
                pl.BlockSpec((bb, d_in), lambda i: (i, 0)),     # obs stream
                pl.BlockSpec(w1.shape, lambda i: (0, 0)),       # resident weights
                pl.BlockSpec(w2.shape, lambda i: (0, 0)),
                pl.BlockSpec(qw.shape, lambda i: (0, 0)),
            ],
            out_specs=pl.BlockSpec((bb, 2), lambda i: (i, 0)),
        ),
        compiler_params=pltpu.CompilerParams(
            dimension_semantics=("parallel",)),                 # v7x: 2 TCs
    )(obs_aug, w1, w2, qw)

    out = out[:B]
    # PyTorch module returns (q1, q2), each of shape (B, 1)
    return out[:, 0:1], out[:, 1:2]


# ------------------------- deterministic param init ------------------------ #
def _xavier_uniform(key, fan_in, fan_out):
    limit = jnp.sqrt(6.0 / (fan_in + fan_out))
    # stored pre-transposed as (in, out) so forward is x @ W
    return jax.random.uniform(key, (fan_in, fan_out), jnp.float32, -limit, limit)


def _bias_default(key, fan_in, fan_out):
    # PyTorch nn.Linear default bias init: U(-1/sqrt(fan_in), 1/sqrt(fan_in))
    bound = 1.0 / jnp.sqrt(jnp.float32(fan_in))
    return jax.random.uniform(key, (1, fan_out), jnp.float32, -bound, bound)


def make_net_params(key, obs_dims=261, action_dims=2, latent_dims=2,
                    fc1_dims=6, features_dim=18):
    """Per-critic parameter dicts (used both for fusion and the reference)."""
    cat_dims = features_dim + action_dims + latent_dims      # 22
    nets = []
    for nk in jax.random.split(key, 2):
        k = jax.random.split(nk, 8)
        nets.append(dict(
            w1=_xavier_uniform(k[0], obs_dims, EN_HIDDEN),
            b1=_bias_default(k[1], obs_dims, EN_HIDDEN),
            w2=_xavier_uniform(k[2], EN_HIDDEN, features_dim),
            b2=_bias_default(k[3], EN_HIDDEN, features_dim),
            fw=_xavier_uniform(k[4], cat_dims, fc1_dims),
            fb=_bias_default(k[5], cat_dims, fc1_dims),
            qw=_xavier_uniform(k[6], fc1_dims, 1),
            qb=_bias_default(k[7], fc1_dims, 1),
        ))
    return nets


def make_fused_params(nets, obs_dims=261, action_dims=2, latent_dims=2,
                      fc1_dims=6, features_dim=18):
    """Fuse both critics into 3 augmented weight matrices (exact up to the
    w2 @ fw_enc reassociation)."""
    n1, n2 = nets
    AS = action_dims + latent_dims                     # 4
    d_in = obs_dims + AS + 1                           # 266
    H2 = 2 * EN_HIDDEN                                 # 200
    h_w = H2 + 2 * AS + 1                              # 209
    x_w = 2 * fc1_dims + 1                             # 13
    fd = features_dim

    # ---- W1 : (266, 209) ----
    w1 = jnp.zeros((d_in, h_w), jnp.float32)
    w1 = w1.at[:obs_dims, 0:EN_HIDDEN].set(n1["w1"])
    w1 = w1.at[:obs_dims, EN_HIDDEN:H2].set(n2["w1"])
    w1 = w1.at[obs_dims + AS, 0:EN_HIDDEN].set(n1["b1"][0])
    w1 = w1.at[obs_dims + AS, EN_HIDDEN:H2].set(n2["b1"][0])
    eye = jnp.eye(AS, dtype=jnp.float32)
    w1 = w1.at[obs_dims:obs_dims + AS, H2:H2 + AS].set(eye)        # ReLU(+as)
    w1 = w1.at[obs_dims:obs_dims + AS, H2 + AS:H2 + 2 * AS].set(-eye)  # ReLU(-as)
    w1 = w1.at[obs_dims + AS, H2 + 2 * AS].set(1.0)                # ones lane

    # ---- W2 : (209, 13)  (en_linear_2 folded into fc1) ----
    w2f1 = n1["w2"] @ n1["fw"][:fd]                    # (100, 6)
    w2f2 = n2["w2"] @ n2["fw"][:fd]
    fb1 = n1["b2"] @ n1["fw"][:fd] + n1["fb"]          # (1, 6)
    fb2 = n2["b2"] @ n2["fw"][:fd] + n2["fb"]
    fa1 = n1["fw"][fd:]                                # (4, 6)
    fa2 = n2["fw"][fd:]

    w2 = jnp.zeros((h_w, x_w), jnp.float32)
    w2 = w2.at[0:EN_HIDDEN, 0:fc1_dims].set(w2f1)
    w2 = w2.at[EN_HIDDEN:H2, fc1_dims:2 * fc1_dims].set(w2f2)
    w2 = w2.at[H2:H2 + AS, 0:fc1_dims].set(fa1)
    w2 = w2.at[H2:H2 + AS, fc1_dims:2 * fc1_dims].set(fa2)
    w2 = w2.at[H2 + AS:H2 + 2 * AS, 0:fc1_dims].set(-fa1)
    w2 = w2.at[H2 + AS:H2 + 2 * AS, fc1_dims:2 * fc1_dims].set(-fa2)
    w2 = w2.at[H2 + 2 * AS, 0:fc1_dims].set(fb1[0])
    w2 = w2.at[H2 + 2 * AS, fc1_dims:2 * fc1_dims].set(fb2[0])
    w2 = w2.at[H2 + 2 * AS, 2 * fc1_dims].set(1.0)                 # ones lane

    # ---- W3 : (13, 2)  (block-diagonal q heads + biases) ----
    qw = jnp.zeros((x_w, 2), jnp.float32)
    qw = qw.at[0:fc1_dims, 0].set(n1["qw"][:, 0])
    qw = qw.at[fc1_dims:2 * fc1_dims, 1].set(n2["qw"][:, 0])
    qw = qw.at[2 * fc1_dims, 0].set(n1["qb"][0, 0])
    qw = qw.at[2 * fc1_dims, 1].set(n2["qb"][0, 0])

    return dict(w1=w1, w2=w2, qw=qw)


# -------------------------- pure-JAX reference ----------------------------- #
def _reference(observation, action, skill, nets):
    outs = []
    for p in nets:
        h = jnp.maximum(observation @ p["w1"] + p["b1"], 0.0)
        enc = h @ p["w2"] + p["b2"]
        x = jnp.concatenate([enc, action, skill], axis=-1)
        x = jnp.maximum(x @ p["fw"] + p["fb"], 0.0)
        outs.append(x @ p["qw"] + p["qb"])
    return outs[0], outs[1]


if __name__ == "__main__":
    key = jax.random.PRNGKey(0)
    kp, ko, ka, ks = jax.random.split(key, 4)

    B = 8
    obs_dims, action_dims, latent_dims = 261, 2, 2
    fc1_dims, features_dim = 6, 18

    nets = make_net_params(kp, obs_dims=obs_dims, action_dims=action_dims,
                           latent_dims=latent_dims, fc1_dims=fc1_dims,
                           features_dim=features_dim)
    fused = make_fused_params(nets, obs_dims=obs_dims, action_dims=action_dims,
                              latent_dims=latent_dims, fc1_dims=fc1_dims,
                              features_dim=features_dim)

    observation = jax.random.normal(ko, (B, obs_dims), jnp.float32)
    action = jax.random.normal(ka, (B, action_dims), jnp.float32)
    skill = jax.random.normal(ks, (B, latent_dims), jnp.float32)

    q1, q2 = double_critic_forward(observation, action, skill, fused)
    jax.block_until_ready((q1, q2))

    r1, r2 = _reference(observation, action, skill, nets)
    assert q1.shape == (B, 1) and q2.shape == (B, 1)
    assert jnp.allclose(q1, r1, atol=2e-4, rtol=2e-4)
    assert jnp.allclose(q2, r2, atol=2e-4, rtol=2e-4)

    print("KERNEL_OK")
</pallas_src>

<mosaic_0001>
module attributes {stable_mosaic.version = 11 : i64} {
  func.func @_double_critic_kernel(%arg0: i32, %arg1: memref<8x266xf32, #tpu.memory_space<vmem>>, %arg2: memref<266x209xf32, #tpu.memory_space<vmem>>, %arg3: memref<209x13xf32, #tpu.memory_space<vmem>>, %arg4: memref<13x2xf32, #tpu.memory_space<vmem>>, %arg5: memref<8x2xf32, #tpu.memory_space<vmem>>) attributes {dimension_semantics = [#tpu.dimension_semantics<parallel>], iteration_bounds = array<i64: 1>, scalar_prefetch = 0 : i64, scratch_operands = 0 : i64, tpu.core_type = #tpu.core_type<tc>, window_params = [{transform_indices = @transform_0, window_bounds = array<i64: 8, 266>}, {pipeline_mode = #tpu.pipeline_mode<synchronous>, transform_indices = @transform_1, window_bounds = array<i64: 266, 209>}, {pipeline_mode = #tpu.pipeline_mode<synchronous>, transform_indices = @transform_2, window_bounds = array<i64: 209, 13>}, {pipeline_mode = #tpu.pipeline_mode<synchronous>, transform_indices = @transform_3, window_bounds = array<i64: 13, 2>}, {transform_indices = @transform_4, window_bounds = array<i64: 8, 2>}]} {
    %c0 = arith.constant 0 : index
    %c0_0 = arith.constant 0 : index
    %0 = vector.load %arg1[%c0, %c0_0] : memref<8x266xf32, #tpu.memory_space<vmem>>, vector<8x266xf32>
    %c0_1 = arith.constant 0 : index
    %c0_2 = arith.constant 0 : index
    %1 = vector.load %arg2[%c0_1, %c0_2] : memref<266x209xf32, #tpu.memory_space<vmem>>, vector<266x209xf32>
    %cst = arith.constant dense<0.000000e+00> : vector<8x209xf32>
    %2 = tpu.matmul %0, %1, %cst {dimension_numbers = #tpu.dot_dimension_numbers<[1], [0], [0], [1], [0, 0, 1, 1], [], []>} : vector<8x266xf32>, vector<266x209xf32>, vector<8x209xf32> -> vector<8x209xf32>
    %cst_3 = arith.constant 0.000000e+00 : f32
    %3 = vector.broadcast %cst_3 : f32 to vector<8x209xf32>
    %4 = arith.maximumf %2, %3 : vector<8x209xf32>
    %c0_4 = arith.constant 0 : index
    %c0_5 = arith.constant 0 : index
    %5 = vector.load %arg3[%c0_4, %c0_5] : memref<209x13xf32, #tpu.memory_space<vmem>>, vector<209x13xf32>
    %cst_6 = arith.constant dense<0.000000e+00> : vector<8x13xf32>
    %6 = tpu.matmul %4, %5, %cst_6 {dimension_numbers = #tpu.dot_dimension_numbers<[1], [0], [0], [1], [0, 0, 1, 1], [], []>} : vector<8x209xf32>, vector<209x13xf32>, vector<8x13xf32> -> vector<8x13xf32>
    %cst_7 = arith.constant 0.000000e+00 : f32
    %7 = vector.broadcast %cst_7 : f32 to vector<8x13xf32>
    %8 = arith.maximumf %6, %7 : vector<8x13xf32>
    %c0_8 = arith.constant 0 : index
    %c0_9 = arith.constant 0 : index
    %9 = vector.load %arg4[%c0_8, %c0_9] : memref<13x2xf32, #tpu.memory_space<vmem>>, vector<13x2xf32>
    %cst_10 = arith.constant dense<0.000000e+00> : vector<8x2xf32>
    %10 = tpu.matmul %8, %9, %cst_10 {dimension_numbers = #tpu.dot_dimension_numbers<[1], [0], [0], [1], [0, 0, 1, 1], [], []>} : vector<8x13xf32>, vector<13x2xf32>, vector<8x2xf32> -> vector<8x2xf32>
    %c0_11 = arith.constant 0 : index
    %c0_12 = arith.constant 0 : index
    %11 = vector.load %arg5[%c0_11, %c0_12] : memref<8x2xf32, #tpu.memory_space<vmem>>, vector<8x2xf32>
    tpu.vector_store %arg5[%c0_11, %c0_12], %10 {strides = array<i32>} : memref<8x2xf32, #tpu.memory_space<vmem>>, vector<8x2xf32>,
    return
  }
  func.func @transform_0(%arg0: i32) -> (i32, i32) {
    %c0_i32 = arith.constant 0 : i32
    %c0_i32_0 = arith.constant 0 : i32
    return %arg0, %c0_i32 : i32, i32
  }
  func.func @transform_1(%arg0: i32) -> (i32, i32) {
    %c0_i32 = arith.constant 0 : i32
    %c0_i32_0 = arith.constant 0 : i32
    %c0_i32_1 = arith.constant 0 : i32
    return %c0_i32, %c0_i32_0 : i32, i32
  }
  func.func @transform_2(%arg0: i32) -> (i32, i32) {
    %c0_i32 = arith.constant 0 : i32
    %c0_i32_0 = arith.constant 0 : i32
    %c0_i32_1 = arith.constant 0 : i32
    return %c0_i32, %c0_i32_0 : i32, i32
  }
  func.func @transform_3(%arg0: i32) -> (i32, i32) {
    %c0_i32 = arith.constant 0 : i32
    %c0_i32_0 = arith.constant 0 : i32
    %c0_i32_1 = arith.constant 0 : i32
    return %c0_i32, %c0_i32_0 : i32, i32
  }
  func.func @transform_4(%arg0: i32) -> (i32, i32) {
    %c0_i32 = arith.constant 0 : i32
    %c0_i32_0 = arith.constant 0 : i32
    return %arg0, %c0_i32 : i32, i32
  }
}

</mosaic_0001>

<bundles_post_ra>
// kernel: tpu_custom_call.1
= control target key start
LH: loop header
LB: loop body
LE: loop exit
PB: predicated region body
PF: predicated region fallthrough
CT: control target
= control target key end

     0   :  { %9 = vsyncpa [#allocation3], 0  ;;  %s613_s15 = smov [#allocation2]   ;;  %s783_s0 = inlined_call_operand.vmem [shape: f32[8,266], index: 0, kind: input, shape index: {}]   ;;  %s784_s1 = inlined_call_operand.hbm [shape: f32[266,209], index: 1, kind: input, shape index: {}]   ;;  %s785_s2 = inlined_call_operand.vmem [shape: f32[209,13], index: 2, kind: input, shape index: {}]   ;;  %s786_s3 = inlined_call_operand.vmem [shape: f32[13,2], index: 3, kind: input, shape index: {}]   ;;  %s787_s4 = inlined_call_operand.vmem [shape: f32[8,2], index: 4, kind: output, shape index: {}]  }
   0x1   :  { %s17_s16 = sshll.u32 %s613_s15, 4  ;;  %s589_s19 = scalar_lea.hbm %s784_s1, 8704  ;;  %s18_s16 = int_to_ptr.vmem [resolvable:$true] %s17_s16 }
   0x2   :  { %p590_p0 = scmp.ne.s32.totalorder %s784_s1, %s589_s19  ;;  %p593_p1 = scmp.lt.u32.totalorder %s589_s19, %s784_s1 }
   0x4   :  { %p595_p2 = pnand %p593_p1, %p590_p0 }
   0x6   :  { %598 = shalt.err (!%p595_p2)
}
   0x7   :  { %s599_s24 = scalar_lea.vmem %s18_s16, 8704  ;;  %p604_p4 = scmp.lt.s32.totalorder %s18_s16, %s18_s16 }
   0x8   :  { %p600_p3 = scmp.ne.s32.totalorder %s18_s16, %s599_s24  ;;  %p605_p5 = scmp.lt.s32.totalorder %s599_s24, %s599_s24 }
   0xa   :  { %p606_p6 = por %p605_p5, %p604_p4 }
   0xc   :  { %p607_p7 = pnand %p606_p6, %p600_p3 }
   0xe   :  { %610 = shalt.err (!%p607_p7)
}
   0xf   :  { %s614_s25 = smov 256   ;;  %s615_s26 = smov 16  }
  0x10   :  { %23 = dma.hbm_to_vmem [thread:$0]  %s784_s1, 8704, %s18_s16, [#allocation3], %s614_s25, %s614_s25, %s615_s26  }
  0x11   :  { %611 = dma.done.wait [#allocation3], 8704  }
  0x12   :  { %612 = vsyncadd [#allocation3], 4294958592  ;;  %v616_v0 = vmov 0.0   ;;  %v35_v1 = vld [vmem:[#allocation2 + $0x8] sm:$0xff]  ;;  %v37_v2 = vld [vmem:[#allocation2 + $0x18] sm:$0xff]  ;;  %vm106_vm0 = vcmask 1041408  }
  0x13   :  { %248 = vmatprep.mubr.f32.mxu1 %v616_v0  ;;  %v34_v3 = vld [vmem:[#allocation2] sm:$0xff]  ;;  %v467_v4 = vpack.c.bf16 %v37_v2, %v35_v1  ;;  %v36_v5 = vld [vmem:[#allocation2 + $0x10] sm:$0xff]  ;;  %v39_v6 = vld [vmem:[#allocation2 + $0x28] sm:$0xff]  ;;  %vm617_vm1 = vmmov 1   ;;  %vm102_vm3 = vcmask 80896   ;;  %v618_v59 = vmov 0.0|0.0  }
  0x14   :  { %v41_v7 = vld [vmem:[#allocation2 + $0x38] sm:$0xff]  ;;  %v469_v8 = vpack.c.bf16 %v36_v5, %v34_v3  ;;  %v38_v10 = vld [vmem:[#allocation2 + $0x20] sm:$0xff]  ;;  %v40_v11 = vld [vmem:[#allocation2 + $0x30] sm:$0xff]  ;;  %vm288_vm4 = vcmask 1040384   ;;  %vm369_vm5 = vcmask 1044480   ;;  %vm284_vm6 = vcmask 662528  }
  0x15   :  { %v471_v9 = vpack.c.bf16 %v41_v7, %v39_v6  ;;  %v43_v12 = vld [vmem:[#allocation2 + $0x48] sm:$0xff]  ;;  %468 = vmatprep.subr.bf16.mxu0 %v467_v4  ;;  %v45_v13 = vld [vmem:[#allocation2 + $0x58] sm:$0xff]  ;;  %v473_v14 = vpack.c.bf16 %v40_v11, %v38_v10  ;;  %v42_v16 = vld [vmem:[#allocation2 + $0x40] sm:$0xff]  ;;  %vm619_vm8 = vmmov 0   ;;  %vm365_vm9 = vcmask 105472  }
  0x16   :  { %470 = vmatpush1.bf16.msra.mxu0 %v469_v8  ;;  %v475_v15 = vpack.c.bf16 %v45_v13, %v43_v12  ;;  %v44_v17 = vld [vmem:[#allocation2 + $0x50] sm:$0xff]  ;;  %v47_v18 = vld [vmem:[#allocation2 + $0x68] sm:$0xff]  ;;  %v49_v19 = vld [vmem:[#allocation2 + $0x78] sm:$0xff]  ;;  %vm443_vm10 = vcmask 15360  }
  0x17   :  { %472 = vmatprep.subr.bf16.mxu0 %v471_v9  ;;  %v477_v20 = vpack.c.bf16 %v44_v17, %v42_v16  ;;  %v479_v21 = vpack.c.bf16 %v49_v19, %v47_v18  ;;  %v46_v22 = vld [vmem:[#allocation2 + $0x60] sm:$0xff]  ;;  %v48_v23 = vld [vmem:[#allocation2 + $0x70] sm:$0xff]  ;;  %v51_v24 = vld [vmem:[#allocation2 + $0x88] sm:$0xff] }
  0x18   :  { %v53_v25 = vld [vmem:[#allocation2 + $0x98] sm:$0xff]  ;;  %v481_v26 = vpack.c.bf16 %v48_v23, %v46_v22  ;;  %v50_v28 = vld [vmem:[#allocation2 + $0x80] sm:$0xff]  ;;  %v52_v29 = vld [vmem:[#allocation2 + $0x90] sm:$0xff] }
  0x19   :  { %v483_v27 = vpack.c.bf16 %v53_v25, %v51_v24  ;;  %v55_v30 = vld [vmem:[#allocation2 + $0xa8] sm:$0xff]  ;;  %v57_v31 = vld [vmem:[#allocation2 + $0xb8] sm:$0xff]  ;;  %v485_v32 = vpack.c.bf16 %v52_v29, %v50_v28  ;;  %v54_v34 = vld [vmem:[#allocation2 + $0xa0] sm:$0xff] }
  0x1a   :  { %474 = vmatpush1.bf16.msra.mxu0 %v473_v14  ;;  %v487_v33 = vpack.c.bf16 %v57_v31, %v55_v30  ;;  %v56_v35 = vld [vmem:[#allocation2 + $0xb0] sm:$0xff]  ;;  %v59_v36 = vld [vmem:[#allocation2 + $0xc8] sm:$0xff]  ;;  %v61_v37 = vld [vmem:[#allocation2 + $0xd8] sm:$0xff] }
  0x1b   :  { %476 = vmatprep.subr.bf16.mxu0 %v475_v15  ;;  %vm659_vm2 = vmpackc.low %vm106_vm0, %vm617_vm1  ;;  %v489_v39 = vpack.c.bf16 %v56_v35, %v54_v34  ;;  %v58_v40 = vld [vmem:[#allocation2 + $0xc0] sm:$0xff]  ;;  %v99_v41 = vld [vmem:[#allocation2 + $0x208] sm:$0xff]  ;;  %v491_v43 = vpack.c.bf16 %v61_v37, %v59_v36 }
  0x1c   :  { %v101_v42 = vld [vmem:[#allocation2 + $0x218] sm:$0x3]  ;;  %v60_v44 = vld [vmem:[#allocation2 + $0xd0] sm:$0xff]  ;;  %v98_v46 = vld [vmem:[#allocation2 + $0x200] sm:$0xff] }
  0x1d   :  { %v531_v45 = vpack.c.bf16 %v101_v42, %v99_v41  ;;  %v100_v47 = vld [vmem:[#allocation2 + $0x210] sm:$0x3]  ;;  %v63_v48 = vld [vmem:[#allocation2 + $0xe8] sm:$0xff]  ;;  %v65_v49 = vld [vmem:[#allocation2 + $0xf8] sm:$0xff]  ;;  %v493_v53 = vpack.c.bf16 %v60_v44, %v58_v40 }
  0x1e   :  { %478 = vmatpush1.bf16.msra.mxu0 %v477_v20  ;;  %v534_v50 = vpack.c.bf16 %v100_v47, %v98_v46  ;;  %v32_v51 = vld [vmem:[%s783_s0 + $0x8] sm:$0xff]  ;;  %v257_v52 = vld [vmem:[%s785_s2] sm:$0xff]  ;;  %v33_v55 = vld [vmem:[%s783_s0 + $0x10] sm:$0xff]  ;;  %v495_v57 = vpack.c.bf16 %v65_v49, %v63_v48 }
  0x1f   :  { %480 = vmatprep.subr.bf16.mxu0 %v479_v21  ;;  %533 = vmatprep.subr.msk.bf16.mxu1 %vm659_vm2, %v531_v45  ;;  %v62_v54 = vld [vmem:[#allocation2 + $0xe0] sm:$0xff]  ;;  %v258_v56 = vld [vmem:[%s785_s2 + $0x8] sm:$0xff]  ;;  %v64_v58 = vld [vmem:[#allocation2 + $0xf0] sm:$0xff] }
  0x20   :  { %177 = vmatprep.mubr.f32.mxu0 %v32_v51  ;;  %536 = vmatpush1.bf16.msk.msra.mxu1 %vm659_vm2, %v534_v50  ;;  %v538_v60 = vpack.c.bf16 %v258_v56, %v257_v52  ;;  %v259_v61 = vld [vmem:[%s785_s2 + $0x10] sm:$0xff]  ;;  %v260_v62 = vld [vmem:[%s785_s2 + $0x18] sm:$0xff]  ;;  %v67_v63 = vld [vmem:[#allocation2 + $0x108] sm:$0xff]  ;;  %v497_v2 = vpack.c.bf16 %v64_v58, %v62_v54 }
  0x21   :  { %537 = vmatprep.subr.bf16.mxu1 %v618_v59  ;;  %v69_v1 = vld [vmem:[#allocation2 + $0x118] sm:$0xff]  ;;  %v66_v3 = vld [vmem:[#allocation2 + $0x100] sm:$0xff]  ;;  %v541_v4 = vpack.c.bf16 %v260_v62, %v259_v61  ;;  %v68_v6 = vld [vmem:[#allocation2 + $0x110] sm:$0xff] }
  0x22   :  { %482 = vmatpush1.bf16.msra.mxu0 %v481_v26  ;;  %v499_v5 = vpack.c.bf16 %v69_v1, %v67_v63  ;;  %v261_v7 = vld [vmem:[%s785_s2 + $0x20] sm:$0xff]  ;;  %v262_v8 = vld [vmem:[%s785_s2 + $0x28] sm:$0xff]  ;;  %v73_v10 = vld [vmem:[#allocation2 + $0x138] sm:$0xff]  ;;  %v501_v11 = vpack.c.bf16 %v68_v6, %v66_v3 }
  0x23   :  { %484 = vmatprep.subr.bf16.mxu0 %v483_v27  ;;  %452 = vmatmul.mubr.msk.f32.vlgmr.msra.gmra.mrb[0].mxu1 %vm102_vm3, %v33_v55  ;;  %v71_v9 = vld [vmem:[#allocation2 + $0x128] sm:$0xff]  ;;  %v70_v12 = vld [vmem:[#allocation2 + $0x120] sm:$0xff]  ;;  %v544_v13 = vpack.c.bf16 %v262_v8, %v261_v7  ;;  %v72_v15 = vld [vmem:[#allocation2 + $0x130] sm:$0xff] }
  0x24   :  { %539 = vmatpush1.bf16.msra.mxu1 %v538_v60  ;;  %v503_v14 = vpack.c.bf16 %v73_v10, %v71_v9  ;;  %v263_v16 = vld [vmem:[%s785_s2 + $0x30] sm:$0xff]  ;;  %v264_v17 = vld [vmem:[%s785_s2 + $0x38] sm:$0xff]  ;;  %v75_v18 = vld [vmem:[#allocation2 + $0x148] sm:$0xff]  ;;  %v505_v20 = vpack.c.bf16 %v72_v15, %v70_v12 }
  0x25   :  { %540 = vmatprep.subr.bf16.mxu1 %v618_v59  ;;  %v77_v19 = vld [vmem:[#allocation2 + $0x158] sm:$0xff]  ;;  %v74_v21 = vld [vmem:[#allocation2 + $0x140] sm:$0xff]  ;;  %v547_v22 = vpack.c.bf16 %v264_v17, %v263_v16  ;;  %v76_v24 = vld [vmem:[#allocation2 + $0x150] sm:$0xff] }
  0x26   :  { %486 = vmatpush1.bf16.msra.mxu0 %v485_v32  ;;  %v507_v23 = vpack.c.bf16 %v77_v19, %v75_v18  ;;  %v265_v25 = vld [vmem:[%s785_s2 + $0x40] sm:$0xff]  ;;  %v266_v26 = vld [vmem:[%s785_s2 + $0x48] sm:$0xff]  ;;  %v81_v28 = vld [vmem:[#allocation2 + $0x178] sm:$0xff]  ;;  %v509_v29 = vpack.c.bf16 %v76_v24, %v74_v21 }
  0x27   :  { %488 = vmatprep.subr.bf16.mxu0 %v487_v33  ;;  %v79_v27 = vld [vmem:[#allocation2 + $0x168] sm:$0xff]  ;;  %v78_v30 = vld [vmem:[#allocation2 + $0x160] sm:$0xff]  ;;  %v550_v31 = vpack.c.bf16 %v266_v26, %v265_v25  ;;  %v80_v33 = vld [vmem:[#allocation2 + $0x170] sm:$0xff] }
  0x28   :  { %542 = vmatpush1.bf16.msra.mxu1 %v541_v4  ;;  %v511_v32 = vpack.c.bf16 %v81_v28, %v79_v27  ;;  %v267_v34 = vld [vmem:[%s785_s2 + $0x50] sm:$0xff]  ;;  %v268_v35 = vld [vmem:[%s785_s2 + $0x58] sm:$0xff]  ;;  %v83_v36 = vld [vmem:[#allocation2 + $0x188] sm:$0xff]  ;;  %v513_v38 = vpack.c.bf16 %v80_v33, %v78_v30 }
  0x29   :  { %543 = vmatprep.subr.bf16.mxu1 %v618_v59  ;;  %v85_v37 = vld [vmem:[#allocation2 + $0x198] sm:$0xff]  ;;  %v553_v40 = vpack.c.bf16 %v268_v35, %v267_v34  ;;  %v84_v42 = vld [vmem:[#allocation2 + $0x190] sm:$0xff]  ;;  %v270_v44 = vld [vmem:[%s785_s2 + $0x68] sm:$0xff] }
  0x2a   :  { %490 = vmatpush1.bf16.msra.mxu0 %v489_v39  ;;  %v82_v39 = vld [vmem:[#allocation2 + $0x180] sm:$0xff]  ;;  %v515_v41 = vpack.c.bf16 %v85_v37, %v83_v36  ;;  %v87_v45 = vld [vmem:[#allocation2 + $0x1a8] sm:$0xff]  ;;  %v89_v46 = vld [vmem:[#allocation2 + $0x1b8] sm:$0xff] }
  0x2b   :  { %492 = vmatprep.subr.bf16.mxu0 %v491_v43  ;;  %v269_v43 = vld [vmem:[%s785_s2 + $0x60] sm:$0xff]  ;;  %v517_v47 = vpack.c.bf16 %v84_v42, %v82_v39  ;;  %v519_v50 = vpack.c.bf16 %v89_v46, %v87_v45  ;;  %v88_v51 = vld [vmem:[#allocation2 + $0x1b0] sm:$0xff]  ;;  %v91_v54 = vld [vmem:[#allocation2 + $0x1c8] sm:$0xff] }
  0x2c   :  { %545 = vmatpush1.bf16.msra.mxu1 %v544_v13  ;;  %v86_v48 = vld [vmem:[#allocation2 + $0x1a0] sm:$0xff]  ;;  %v556_v49 = vpack.c.bf16 %v270_v44, %v269_v43  ;;  %v271_v52 = vld [vmem:[%s785_s2 + $0x70] sm:$0xff]  ;;  %v93_v55 = vld [vmem:[#allocation2 + $0x1d8] sm:$0xff] }
  0x2d   :  { %546 = vmatprep.subr.bf16.mxu1 %v618_v59  ;;  %v521_v56 = vpack.c.bf16 %v88_v51, %v86_v48  ;;  %v523_v60 = vpack.c.bf16 %v93_v55, %v91_v54  ;;  %v92_v61 = vld [vmem:[#allocation2 + $0x1d0] sm:$0xff]  ;;  %v273_v62 = vld [vmem:[%s785_s2 + $0x80] sm:$0xff]  ;;  %v274_v63 = vld [vmem:[%s785_s2 + $0x88] sm:$0xff] }
  0x2e   :  { %494 = vmatpush1.bf16.msra.mxu0 %v493_v53  ;;  %v272_v53 = vld [vmem:[%s785_s2 + $0x78] sm:$0xff]  ;;  %v95_v1 = vld [vmem:[#allocation2 + $0x1e8] sm:$0xff]  ;;  %v94_v4 = vld [vmem:[#allocation2 + $0x1e0] sm:$0xff] }
  0x2f   :  { %496 = vmatprep.subr.bf16.mxu0 %v495_v57  ;;  %v90_v57 = vld [vmem:[#allocation2 + $0x1c0] sm:$0xff]  ;;  %v559_v58 = vpack.c.bf16 %v272_v53, %v271_v52  ;;  %v96_v7 = vld [vmem:[#allocation2 + $0x1f0] sm:$0xff]  ;;  %v276_v9 = vld [vmem:[%s785_s2 + $0x98] sm:$0xff] }
  0x30   :  { %548 = vmatpush1.bf16.msra.mxu1 %v547_v22  ;;  %v525_v3 = vpack.c.bf16 %v92_v61, %v90_v57  ;;  %v275_v8 = vld [vmem:[%s785_s2 + $0x90] sm:$0xff]  ;;  %v529_v10 = vpack.c.bf16 %v96_v7, %v94_v4  ;;  %v277_v12 = vld [vmem:[%s785_s2 + $0xa0] sm:$0xff]  ;;  %v278_v13 = vld [vmem:[%s785_s2 + $0xa8] sm:$0xff] }
  0x31   :  { %549 = vmatprep.subr.bf16.mxu1 %v618_v59  ;;  %v568_v15 = vpack.c.bf16 %v278_v13, %v277_v12  ;;  %v279_v16 = vld [vmem:[%s785_s2 + $0xb0] sm:$0xff]  ;;  %v280_v17 = vld [vmem:[%s785_s2 + $0xb8] sm:$0xff]  ;;  %v281_v19 = vld [vmem:[%s785_s2 + $0xc0] sm:$0xff] }
  0x32   :  { %498 = vmatpush1.bf16.msra.mxu0 %v497_v2  ;;  %v97_v2 = vld [vmem:[#allocation2 + $0x1f8] sm:$0xff]  ;;  %v571_v18 = vpack.c.bf16 %v280_v17, %v279_v16  ;;  %v283_v22 = vld [vmem:[%s785_s2 + $0xd0] sm:$0x1]  ;;  %v363_v28 = vld [vmem:[%s786_s3] sm:$0xff] }
  0x33   :  { %500 = vmatprep.subr.bf16.mxu0 %v499_v5  ;;  %v562_v5 = vpack.c.bf16 %v274_v63, %v273_v62  ;;  %v527_v6 = vpack.c.bf16 %v97_v2, %v95_v1  ;;  %vm578_vm7 = vmpackc.low %vm369_vm5, %vm617_vm1 }
  0x34   :  { %551 = vmatpush1.bf16.msra.mxu1 %v550_v31 }
  0x35   :  { %552 = vmatprep.subr.bf16.mxu1 %v618_v59 }
  0x36   :  { %502 = vmatpush1.bf16.msra.mxu0 %v501_v11  ;;  %v565_v11 = vpack.c.bf16 %v276_v9, %v275_v8 }
  0x37   :  { %504 = vmatprep.subr.bf16.mxu0 %v503_v14  ;;  %v31_v14 = vld [vmem:[%s783_s0] sm:$0xff] }
  0x38   :  { %554 = vmatpush1.bf16.msra.mxu1 %v553_v40 }
  0x39   :  { %555 = vmatprep.subr.bf16.mxu1 %v618_v59 }
  0x3a   :  { %506 = vmatpush1.bf16.msra.mxu0 %v505_v20  ;;  %v282_v20 = vld [vmem:[%s785_s2 + $0xc8] sm:$0xff] }
  0x3b   :  { %508 = vmatprep.subr.bf16.mxu0 %v507_v23  ;;  %v574_v21 = vpack.c.bf16 %v282_v20, %v281_v19 }
  0x3c   :  { %557 = vmatpush1.bf16.msra.mxu1 %v556_v49 }
  0x3d   :  { %558 = vmatprep.subr.bf16.mxu1 %v618_v59 }
  0x3e   :  { %510 = vmatpush1.bf16.msra.mxu0 %v509_v29  ;;  %v364_v29 = vld [vmem:[%s786_s3 + $0x8] sm:$0x1f] }
  0x3f   :  { %512 = vmatprep.subr.bf16.mxu0 %v511_v32  ;;  %v577_v32 = vpack.c.bf16 %v364_v29, %v363_v28 }
  0x40   :  { %560 = vmatpush1.bf16.msra.mxu1 %v559_v58 }
  0x41   :  { %561 = vmatprep.subr.bf16.mxu1 %v618_v59 }
  0x42   :  { %514 = vmatpush1.bf16.msra.mxu0 %v513_v38 }
  0x43   :  { %516 = vmatprep.subr.bf16.mxu0 %v515_v41 }
  0x44   :  { %563 = vmatpush1.bf16.msra.mxu1 %v562_v5 }
  0x45   :  { %564 = vmatprep.subr.bf16.mxu1 %v618_v59 }
  0x46   :  { %518 = vmatpush1.bf16.msra.mxu0 %v517_v47 }
  0x47   :  { %520 = vmatprep.subr.bf16.mxu0 %v519_v50 }
  0x48   :  { %566 = vmatpush1.bf16.msra.mxu1 %v565_v11 }
  0x49   :  { %567 = vmatprep.subr.bf16.mxu1 %v618_v59 }
  0x4a   :  { %522 = vmatpush1.bf16.msra.mxu0 %v521_v56 }
  0x4b   :  { %524 = vmatprep.subr.bf16.mxu0 %v523_v60 }
  0x4c   :  { %569 = vmatpush1.bf16.msra.mxu1 %v568_v15 }
  0x4d   :  { %570 = vmatprep.subr.bf16.mxu1 %v618_v59 }
  0x4e   :  { %526 = vmatpush1.bf16.msra.mxu0 %v525_v3 }
  0x4f   :  { %528 = vmatprep.subr.bf16.mxu0 %v527_v6 }
  0x50   :  { %572 = vmatpush1.bf16.msra.mxu1 %v571_v18 }
  0x51   :  { %573 = vmatprep.subr.bf16.mxu1 %v618_v59 }
  0x52   :  { %530 = vmatpush1.bf16.msra.mxu0 %v529_v10 }
  0x54   :  { %575 = vmatpush1.bf16.msra.mxu1 %v574_v21 }
  0x55   :  { %178 = vmatmul.mubr.f32.vlgmr.msra.gmra.mrb[0].mxu0 %v31_v14  ;;  %344 = vmatprep.subr.mxu1 %v616_v0 }
  0x58   :  { %453 = vmatpush1.msk.msra.mxu1 %vm288_vm4, %v283_v22 }
  0x59   :  { %576 = vmatprep.subr.bf16.mxu1 %v618_v59 }
  0xf6   :  { %v250_v23 = vpop.f32.mrb[0].mxu1 }
  0xf7   :  { %v252_v24 = vpop.f32.mrb[1].mxu1 }
 0x128   :  { %v179_v25 = vpop.f32.mrb[0].mxu0 }
 0x129   :  { %v251_v26 = vadd.f32 %v250_v23, %v179_v25  ;;  %v181_v27 = vpop.f32.mrb[1].mxu0 }
 0x12a   :  { %v253_v30 = vadd.f32 %v252_v24, %v181_v27 }
 0x12b   :  { %v255_v59 = vmax.f32 %v251_v26, 0.0 }
 0x12c   :  { %v256_v31 = vmax.f32 %v253_v30, 0.0 }
 0x12e   :  { %454 = vmatprep.mubr.msk.f32.mxu1 %vm284_vm6, %v256_v31 }
 0x12f   :  { %357 = vmatmul.mubr.f32.vlgmr.msra.gmra.mrb[2].mxu1 %v255_v59 }
 0x130   :  { %579 = vmatpush3.bf16.msk.msra.mxu1 %vm578_vm7, %v577_v32  ;;  %464 = vmatprep.mubr.msk.f32.mxu1 %vm619_vm8, %v616_v0 }
 0x202   :  { %v358_v33 = vpop.f32.mrb[2].mxu1 }
 0x203   :  { %v362_v34 = vmax.f32 %v358_v33, 0.0  ;;  %v360_v35 = vpop.f32.mrb[3].mxu1 }
 0x205   :  { %465 = vmatmul.mubr.msk.f32.vlgmr.msra.gmra.mrb[4].mxu1 %vm365_vm9, %v362_v34 }
 0x2d8   :  { %v439_v36 = vpop.f32.mrb[4].mxu1 }
 0x2d9   :  { %444 = vst.msk [vmem:[%s787_s4] sm:$0xff] %vm443_vm10, %v439_v36  ;;  %v466_v37 = vpop.f32.mrb[5].mxu1 }
 0x2da   :  { %449 = vsyncpa [#allocation3], 1 }

</bundles_post_ra>
